<compile_context>
chip_gen: v7x
topology: tpu7x:2x2x1
jax: 0.10.0
libtpu: 0.0.40
codegen_flags: <defaults>
</compile_context>

<pallas_src>
import functools
import math

import jax
import jax.numpy as jnp
from jax.experimental import pallas as pl
from jax.experimental.pallas import tpu as pltpu


def _focal_loss_kernel(p_ref, t_ref, out_ref, acc_ref, *, gamma, alpha,
                       n_valid, tiles_per_partial, tile_rows, lanes,
                       needs_mask):
    i = pl.program_id(0)          # partial index ("parallel" axis)
    k = pl.program_id(1)          # reduction step ("arbitrary" axis)

    @pl.when(k == 0)
    def _():
        acc_ref[...] = jnp.zeros_like(acc_ref)

    epsilon = jnp.float32(1e-09)
    t = t_ref[...].astype(jnp.float32)
    p = p_ref[...].astype(jnp.float32) + epsilon
    pt = p * t + (1.0 - p) * (1.0 - t)
    ce = -jnp.log(pt)
    q = 1.0 - pt

    # weight = (1 - pt) ** gamma.  Specialize small integer gamma to VALU
    # multiplies; EUP transcendental fallback only for non-integer gamma.
    g = float(gamma)
    if g == int(g) and 0 <= int(g) <= 8:
        gi = int(g)
        if gi == 0:
            weight = jnp.ones_like(q)
        else:
            weight = q
            for _ in range(gi - 1):
                weight = weight * q
    else:
        weight = q ** jnp.float32(gamma)

    loss = weight * ce
    if float(alpha) != 1.0:
        loss = loss * jnp.float32(alpha)

    if needs_mask:
        # Mask out zero-padded tail elements so the sum/mean is exact.
        row = jax.lax.broadcasted_iota(jnp.int32, loss.shape, 0)
        lane = jax.lax.broadcasted_iota(jnp.int32, loss.shape, 1)
        base = (i * tiles_per_partial + k) * (tile_rows * lanes)
        limit = jnp.int32(n_valid) - base
        loss = jnp.where(row * lanes + lane < limit, loss, 0.0)

    # Sublane-reduce this tile (VALU cross-vreg adds + one XLU reduce) and
    # accumulate into the tiny per-partial accumulator.
    acc_ref[...] += jnp.sum(loss, axis=0, keepdims=True)

    @pl.when(k == tiles_per_partial - 1)
    def _():
        out_ref[0] = acc_ref[...]          # lane-dense (1, 128) store


def focal_loss(inputs, targets, gamma: float = 2.0, alpha: float = 1.0,
               size_average: bool = True, tile_rows: int = 1024):
    """Pallas TPU implementation of FocalLoss.forward.

    inputs  : [batch_size, num_cls] probabilities (post-softmax)
    targets : [batch_size, num_cls] (e.g. one-hot labels)
    returns : scalar f32 loss
    """
    assert inputs.shape == targets.shape

    LANES = 128
    SUB = 8
    n = math.prod(inputs.shape)
    rows = -(-n // LANES)                        # ceil(n / 128)

    # Split rows across partials ("parallel" axis, megacore on v7x), then pick
    # the tile height from the actual per-partial row count so padding is at
    # most one 8-row round-up per partial.
    num_partials = 2 if rows >= 2 * SUB else 1
    rows_per_partial = -(-rows // num_partials)
    rows_per_partial = -(-rows_per_partial // SUB) * SUB   # multiple of 8

    tr = max(SUB, (int(tile_rows) // SUB) * SUB)
    tr = min(tr, rows_per_partial)

    tiles_per_partial = -(-rows_per_partial // tr)
    padded_rows = num_partials * tiles_per_partial * tr
    padded_n = padded_rows * LANES

    p_flat = inputs.reshape(-1)
    t_flat = targets.reshape(-1)
    if padded_n != n:
        p_flat = jnp.pad(p_flat, (0, padded_n - n))
        t_flat = jnp.pad(t_flat, (0, padded_n - n))
    p2d = p_flat.reshape(padded_rows, LANES)
    t2d = t_flat.reshape(padded_rows, LANES)

    kernel = functools.partial(
        _focal_loss_kernel,
        gamma=float(gamma),
        alpha=float(alpha),
        n_valid=n,
        tiles_per_partial=tiles_per_partial,
        tile_rows=tr,
        lanes=LANES,
        needs_mask=(padded_n != n),
    )

    in_map = lambda i, k: (i * tiles_per_partial + k, 0)

    partials = pl.pallas_call(
        kernel,
        out_shape=jax.ShapeDtypeStruct((num_partials, 1, LANES), jnp.float32),
        grid_spec=pltpu.PrefetchScalarGridSpec(
            num_scalar_prefetch=0,
            grid=(num_partials, tiles_per_partial),
            in_specs=[
                pl.BlockSpec((tr, LANES), in_map),
                pl.BlockSpec((tr, LANES), in_map),
            ],
            out_specs=pl.BlockSpec((1, 1, LANES), lambda i, k: (i, 0, 0)),
            scratch_shapes=[pltpu.VMEM((1, LANES), jnp.float32)],
        ),
        compiler_params=pltpu.CompilerParams(
            dimension_semantics=("parallel", "arbitrary"),
            vmem_limit_bytes=32 * 1024 * 1024,
        ),
    )(p2d, t2d)

    total = jnp.sum(partials)
    if size_average:
        total = total / jnp.float32(n)
    return total


def focal_loss_ref(inputs, targets, gamma=2.0, alpha=1.0, size_average=True):
    """Pure-JAX reference mirroring the PyTorch forward exactly."""
    epsilon = 1e-09
    t = targets.astype(jnp.float32)
    p = inputs.astype(jnp.float32) + epsilon
    pt = p * t + (1.0 - p) * (1.0 - t)
    ce = -jnp.log(pt)
    weight = (1.0 - pt) ** gamma
    loss = weight * alpha * ce
    return jnp.mean(loss) if size_average else jnp.sum(loss)


def _make_case(key, batch, num_cls):
    k_logits, k_labels = jax.random.split(key)
    logits = jax.random.normal(k_logits, (batch, num_cls), jnp.float32)
    probs = jax.nn.softmax(logits, axis=-1)
    labels = jax.random.randint(k_labels, (batch,), 0, num_cls)
    onehot = jax.nn.one_hot(labels, num_cls, dtype=jnp.float32)
    return probs, onehot


if __name__ == "__main__":
    root = jax.random.PRNGKey(0)
    k0, k1, k2 = jax.random.split(root, 3)

    # Case 1: module-default small shape [batch_size, num_cls], mean reduction.
    probs, onehot = _make_case(k0, 8, 16)
    out = jax.block_until_ready(focal_loss(probs, onehot, gamma=2.0,
                                           alpha=1.0, size_average=True))
    ref = focal_loss_ref(probs, onehot, gamma=2.0, alpha=1.0, size_average=True)
    assert jnp.allclose(out, ref, rtol=1e-4, atol=1e-6), (out, ref)

    # Case 2: sum reduction, non-128 class count (exercises lane padding+mask).
    probs, onehot = _make_case(k1, 64, 100)
    out = jax.block_until_ready(focal_loss(probs, onehot, gamma=2.0,
                                           alpha=1.0, size_average=False))
    ref = focal_loss_ref(probs, onehot, gamma=2.0, alpha=1.0, size_average=False)
    assert jnp.allclose(out, ref, rtol=1e-4, atol=1e-6), (out, ref)

    # Case 3: multi-tile case (exercises 2 parallel partials + reduction grid).
    probs, onehot = _make_case(k2, 600, 250)
    out = jax.block_until_ready(focal_loss(probs, onehot, gamma=2.0,
                                           alpha=0.25, size_average=True))
    ref = focal_loss_ref(probs, onehot, gamma=2.0, alpha=0.25, size_average=True)
    assert jnp.allclose(out, ref, rtol=1e-4, atol=1e-6), (out, ref)

    # Case 4: non-integer gamma (jnp.power fallback path).
    out = jax.block_until_ready(focal_loss(probs, onehot, gamma=1.5,
                                           alpha=1.0, size_average=True))
    ref = focal_loss_ref(probs, onehot, gamma=1.5, alpha=1.0, size_average=True)
    assert jnp.allclose(out, ref, rtol=1e-4, atol=1e-6), (out, ref)

    print("KERNEL_OK")
</pallas_src>

<mosaic_0001>
module attributes {stable_mosaic.version = 11 : i64} {
  func.func @_focal_loss_kernel(%arg0: i32, %arg1: i32, %arg2: memref<8x128xf32, #tpu.memory_space<vmem>>, %arg3: memref<8x128xf32, #tpu.memory_space<vmem>>, %arg4: memref<1x1x128xf32, #tpu.memory_space<vmem>>, %arg5: memref<1x128xf32, #tpu.memory_space<vmem>>) attributes {dimension_semantics = [#tpu.dimension_semantics<parallel>, #tpu.dimension_semantics<arbitrary>], iteration_bounds = array<i64: 1, 1>, scalar_prefetch = 0 : i64, scratch_operands = 1 : i64, tpu.core_type = #tpu.core_type<tc>, window_params = [{transform_indices = @transform_0, window_bounds = array<i64: 8, 128>}, {transform_indices = @transform_1, window_bounds = array<i64: 8, 128>}, {transform_indices = @transform_2, window_bounds = array<i64: 1, 1, 128>}]} {
    %c0_i32 = arith.constant 0 : i32
    %0 = arith.cmpi eq, %arg1, %c0_i32 : i32
    %1 = arith.extui %0 : i1 to i32
    %c0_i32_0 = arith.constant 0 : i32
    %2 = arith.cmpi ne, %1, %c0_i32_0 : i32
    scf.if %2 {
      %cst_17 = arith.constant 0.000000e+00 : f32
      %42 = vector.broadcast %cst_17 : f32 to vector<1x128xf32>
      %c0_18 = arith.constant 0 : index
      %c0_19 = arith.constant 0 : index
      %43 = vector.load %arg5[%c0_18, %c0_19] : memref<1x128xf32, #tpu.memory_space<vmem>>, vector<1x128xf32>
      tpu.vector_store %arg5[%c0_18, %c0_19], %42 {strides = array<i32>} : memref<1x128xf32, #tpu.memory_space<vmem>>, vector<1x128xf32>,
    } else {
    }
    %c0 = arith.constant 0 : index
    %c0_1 = arith.constant 0 : index
    %3 = vector.load %arg3[%c0, %c0_1] : memref<8x128xf32, #tpu.memory_space<vmem>>, vector<8x128xf32>
    %c0_2 = arith.constant 0 : index
    %c0_3 = arith.constant 0 : index
    %4 = vector.load %arg2[%c0_2, %c0_3] : memref<8x128xf32, #tpu.memory_space<vmem>>, vector<8x128xf32>
    %cst = arith.constant 9.99999971E-10 : f32
    %5 = vector.broadcast %cst : f32 to vector<8x128xf32>
    %6 = arith.addf %4, %5 : vector<8x128xf32>
    %7 = arith.mulf %6, %3 : vector<8x128xf32>
    %cst_4 = arith.constant 1.000000e+00 : f32
    %8 = vector.broadcast %cst_4 : f32 to vector<8x128xf32>
    %9 = arith.subf %8, %6 : vector<8x128xf32>
    %cst_5 = arith.constant 1.000000e+00 : f32
    %10 = vector.broadcast %cst_5 : f32 to vector<8x128xf32>
    %11 = arith.subf %10, %3 : vector<8x128xf32>
    %12 = arith.mulf %9, %11 : vector<8x128xf32>
    %13 = arith.addf %7, %12 : vector<8x128xf32>
    %14 = math.log %13 : vector<8x128xf32>
    %cst_6 = arith.constant 0.000000e+00 : f32
    %15 = vector.broadcast %cst_6 : f32 to vector<8x128xf32>
    %16 = arith.subf %15, %14 : vector<8x128xf32>
    %cst_7 = arith.constant 1.000000e+00 : f32
    %17 = vector.broadcast %cst_7 : f32 to vector<8x128xf32>
    %18 = arith.subf %17, %13 : vector<8x128xf32>
    %19 = arith.mulf %18, %18 : vector<8x128xf32>
    %20 = arith.mulf %19, %16 : vector<8x128xf32>
    %21 = tpu.iota {dimensions = array<i32: 0>} : vector<8x128xi32>
    %22 = tpu.iota {dimensions = array<i32: 1>} : vector<8x128xi32>
    %c1_i32 = arith.constant 1 : i32
    %23 = arith.muli %arg0, %c1_i32 : i32
    %24 = arith.addi %23, %arg1 : i32
    %c1024_i32 = arith.constant 1024 : i32
    %25 = arith.muli %24, %c1024_i32 : i32
    %c128_i32 = arith.constant 128 : i32
    %26 = arith.subi %c128_i32, %25 : i32
    %c128_i32_8 = arith.constant 128 : i32
    %27 = vector.broadcast %c128_i32_8 : i32 to vector<8x128xi32>
    %28 = arith.muli %21, %27 : vector<8x128xi32>
    %29 = arith.addi %28, %22 : vector<8x128xi32>
    %30 = vector.broadcast %26 : i32 to vector<8x128xi32>
    %31 = arith.cmpi slt, %29, %30 : vector<8x128xi32>
    %cst_9 = arith.constant 0.000000e+00 : f32
    %32 = vector.broadcast %cst_9 : f32 to vector<8x128xf32>
    %33 = arith.select %31, %20, %32 : vector<8x128xi1>, vector<8x128xf32>
    %c0_10 = arith.constant 0 : index
    %c0_11 = arith.constant 0 : index
    %34 = vector.load %arg5[%c0_10, %c0_11] : memref<1x128xf32, #tpu.memory_space<vmem>>, vector<1x128xf32>
    %cst_12 = arith.constant dense<0.000000e+00> : vector<128xf32>
    %35 = vector.multi_reduction <add>, %33, %cst_12 [0] : vector<8x128xf32> to vector<128xf32>
    %36 = vector.shape_cast %35 : vector<128xf32> to vector<1x128xf32>
    %37 = arith.addf %34, %36 : vector<1x128xf32>
    %c0_13 = arith.constant 0 : index
    %c0_14 = arith.constant 0 : index
    %38 = vector.load %arg5[%c0_13, %c0_14] : memref<1x128xf32, #tpu.memory_space<vmem>>, vector<1x128xf32>
    tpu.vector_store %arg5[%c0_13, %c0_14], %37 {strides = array<i32>} : memref<1x128xf32, #tpu.memory_space<vmem>>, vector<1x128xf32>,
    %c0_i32_15 = arith.constant 0 : i32
    %39 = arith.cmpi eq, %arg1, %c0_i32_15 : i32
    %40 = arith.extui %39 : i1 to i32
    %c0_i32_16 = arith.constant 0 : i32
    %41 = arith.cmpi ne, %40, %c0_i32_16 : i32
    scf.if %41 {
      %c0_17 = arith.constant 0 : index
      %c0_18 = arith.constant 0 : index
      %42 = vector.load %arg5[%c0_17, %c0_18] : memref<1x128xf32, #tpu.memory_space<vmem>>, vector<1x128xf32>
      %c0_19 = arith.constant 0 : index
      %c0_20 = arith.constant 0 : index
      %c0_21 = arith.constant 0 : index
      %43 = vector.load %arg4[%c0_19, %c0_20, %c0_21] : memref<1x1x128xf32, #tpu.memory_space<vmem>>, vector<1x1x128xf32>
      %44 = vector.shape_cast %43 : vector<1x1x128xf32> to vector<1x128xf32>
      %45 = vector.shape_cast %42 : vector<1x128xf32> to vector<1x1x128xf32>
      tpu.vector_store %arg4[%c0_19, %c0_20, %c0_21], %45 {strides = array<i32>} : memref<1x1x128xf32, #tpu.memory_space<vmem>>, vector<1x1x128xf32>,
    } else {
    }
    return
  }
  func.func @transform_0(%arg0: i32, %arg1: i32) -> (i32, i32) {
    %c1_i32 = arith.constant 1 : i32
    %0 = arith.muli %arg0, %c1_i32 : i32
    %1 = arith.addi %0, %arg1 : i32
    %c0_i32 = arith.constant 0 : i32
    %c0_i32_0 = arith.constant 0 : i32
    return %1, %c0_i32 : i32, i32
  }
  func.func @transform_1(%arg0: i32, %arg1: i32) -> (i32, i32) {
    %c1_i32 = arith.constant 1 : i32
    %0 = arith.muli %arg0, %c1_i32 : i32
    %1 = arith.addi %0, %arg1 : i32
    %c0_i32 = arith.constant 0 : i32
    %c0_i32_0 = arith.constant 0 : i32
    return %1, %c0_i32 : i32, i32
  }
  func.func @transform_2(%arg0: i32, %arg1: i32) -> (i32, i32, i32) {
    %c0_i32 = arith.constant 0 : i32
    %c0_i32_0 = arith.constant 0 : i32
    %c0_i32_1 = arith.constant 0 : i32
    return %arg0, %c0_i32, %c0_i32_0 : i32, i32, i32
  }
}

</mosaic_0001>

<bundles_post_ra>
// kernel: tpu_custom_call.1
= control target key start
LH: loop header
LB: loop body
LE: loop exit
PB: predicated region body
PF: predicated region fallthrough
CT: control target
= control target key end

     0   :  { %7 = vsyncpa [#allocation4], 0  ;;  %s238_s0 = inlined_call_operand.hbm [shape: f32[8,128], index: 0, kind: input, shape index: {}]   ;;  %s239_s1 = inlined_call_operand.hbm [shape: f32[8,128], index: 1, kind: input, shape index: {}]   ;;  %s240_s2 = inlined_call_operand.hbm [shape: f32[1,1,128], index: 2, kind: output, shape index: {}]  }
   0x1   :  { %8 = vsyncpa [#allocation7], 0 }
   0x2   :  { %9 = vsyncpa [#allocation5], 0  ;;  %s183_s9 = smov [#allocation3]   ;;  %s184_s11 = smov [#allocation6]  }
   0x3   :  { %s19_s10 = sshll.u32 %s183_s9, 4  ;;  %s32_s12 = sshll.u32 %s184_s11, 4  ;;  %s20_s10 = int_to_ptr.vmem [resolvable:$true] %s19_s10  ;;  %s33_s12 = int_to_ptr.vmem [resolvable:$true] %s32_s12 }
   0x4   :  { %s111_s15 = scalar_lea.hbm %s238_s0, 128 }
   0x5   :  { %p112_p0 = scmp.ne.s32.totalorder %s238_s0, %s111_s15  ;;  %p115_p1 = scmp.lt.u32.totalorder %s111_s15, %s238_s0 }
   0x7   :  { %p117_p2 = pnand %p115_p1, %p112_p0 }
   0x9   :  { %120 = shalt.err (!%p117_p2)
}
   0xa   :  { %s121_s20 = scalar_lea.vmem %s20_s10, 128  ;;  %p126_p4 = scmp.lt.s32.totalorder %s20_s10, %s20_s10 }
   0xb   :  { %p122_p3 = scmp.ne.s32.totalorder %s20_s10, %s121_s20  ;;  %p127_p5 = scmp.lt.s32.totalorder %s121_s20, %s121_s20 }
   0xd   :  { %p128_p6 = por %p127_p5, %p126_p4 }
   0xf   :  { %p129_p7 = pnand %p128_p6, %p122_p3 }
  0x11   :  { %132 = shalt.err (!%p129_p7)
}
  0x12   :  { %22 = dma.hbm_to_vmem [thread:$0]  %s238_s0, 128, %s20_s10, [#allocation4]  }
  0x13   :  { %s133_s25 = scalar_lea.hbm %s239_s1, 128 }
  0x14   :  { %p134_p8 = scmp.ne.s32.totalorder %s239_s1, %s133_s25  ;;  %p137_p9 = scmp.lt.u32.totalorder %s133_s25, %s239_s1 }
  0x16   :  { %p139_p10 = pnand %p137_p9, %p134_p8 }
  0x18   :  { %142 = shalt.err (!%p139_p10)
}
  0x19   :  { %s143_s30 = scalar_lea.vmem %s33_s12, 128  ;;  %p148_p12 = scmp.lt.s32.totalorder %s33_s12, %s33_s12 }
  0x1a   :  { %p144_p11 = scmp.ne.s32.totalorder %s33_s12, %s143_s30  ;;  %p149_p13 = scmp.lt.s32.totalorder %s143_s30, %s143_s30 }
  0x1c   :  { %p150_p0 = por %p149_p13, %p148_p12 }
  0x1e   :  { %p151_p1 = pnand %p150_p0, %p144_p11 }
  0x20   :  { %154 = shalt.err (!%p151_p1)
}
  0x21   :  { %35 = dma.hbm_to_vmem [thread:$0]  %s239_s1, 128, %s33_s12, [#allocation7]  }
  0x22   :  { %177 = dma.done.wait [#allocation4], 128  }
  0x23   :  { %178 = vsyncadd [#allocation4], 4294967168 }
  0x24   :  { %179 = dma.done.wait [#allocation7], 128  }
  0x25   :  { %180 = vsyncadd [#allocation7], 4294967168  ;;  %v185_v0 = vmov 0.0   ;;  %v49_v1 = vld [vmem:[#allocation6] sm:$0xff]  ;;  %v50_v2 = vld [vmem:[#allocation3] sm:$0xff]  ;;  %v63_v9 = vlaneseq  ;;  %s186_s1 = smov [#allocation8]  }
  0x26   :  { %48 = vst [vmem:[#allocation2] sm:$0x1] %v185_v0  ;;  %v51_v3 = vadd.f32 1e-09, %v50_v2  ;;  %v54_v4 = vsub.f32 1.0, %v49_v1  ;;  %s95_s4 = sshll.u32 %s186_s1, 4  ;;  %s96_s4 = int_to_ptr.vmem [resolvable:$true] %s95_s4 }
  0x27   :  { %v64_v10 = vshrl.u32 %v63_v9, 7  ;;  %v66_v11 = vand.u32 127, %v63_v9  ;;  %s155_s5 = scalar_lea.vmem %s96_s4, 16  ;;  %s159_s6 = scalar_lea.vmem %s96_s4, 32 }
  0x28   :  { %v52_v5 = vmul.f32 %v51_v3, %v49_v1  ;;  %v53_v6 = vsub.f32 1.0, %v51_v3  ;;  %p156_p2 = scmp.ne.s32.totalorder %s96_s4, %s155_s5  ;;  %p160_p3 = scmp.lt.s32.totalorder %s96_s4, %s96_s4 }
  0x29   :  { %v70_v12 = vmul.u32 128, %v64_v10  ;;  %p161_p4 = scmp.lt.s32.totalorder %s159_s6, %s155_s5 }
  0x2a   :  { %v55_v7 = vmul.f32 %v54_v4, %v53_v6 }
  0x2b   :  { %v71_v15 = vadd.s32 %v70_v12, %v66_v11  ;;  %p162_p5 = por %p161_p4, %p160_p3 }
  0x2c   :  { %v56_v8 = vadd.f32 %v55_v7, %v52_v5 }
  0x2d   :  { %vm73_vm0 = vcmp.lt.s32.totalorder %v71_v15, 128  ;;  %v75_v26 = vld [vmem:[#allocation2] sm:$0x1]  ;;  %p163_p6 = pnand %p162_p5, %p156_p2 }
  0x2e   :  { %109 = vlog2.f32 %v56_v8  ;;  %v60_v13 = vsub.f32 1.0, %v56_v8 }
  0x30   :  { %v61_v17 = vmul.f32 %v60_v13, %v60_v13 }
  0x38   :  { %v110_v14 = vpop.eup %109 }
  0x39   :  { %v58_v16 = vmul.f32 0.6931472, %v110_v14 }
  0x3b   :  { %v59_v18 = vsub.f32 0.0, %v58_v16 }
  0x3d   :  { %v62_v19 = vmul.f32 %v61_v17, %v59_v18 }
  0x3f   :  { %v74_v20 = vsel %vm73_vm0, %v62_v19, 0.0 }
  0x40   :  { %v76_v21 = vrot.slane %v74_v20, 4 }
  0x42   :  { %v77_v22 = vadd.f32 %v76_v21, %v74_v20 }
  0x44   :  { %v78_v23 = vrot.slane %v77_v22, 2 }
  0x46   :  { %v79_v24 = vadd.f32 %v78_v23, %v77_v22 }
  0x48   :  { %v80_v25 = vrot.slane %v79_v24, 1 }
  0x4a   :  { %v81_v27 = vadd.f32 %v80_v25, %v79_v24 }
  0x4c   :  { %v82_v28 = vadd.f32 %v81_v27, %v75_v26 }
  0x4e   :  { %83 = vst [vmem:[#allocation2] sm:$0x1] %v82_v28 }
  0x55   :  { %v87_v29 = vld [vmem:[#allocation2] sm:$0x1] }
  0x56   :  { %88 = vst [vmem:[#allocation8] sm:$0x1] %v87_v29 }
  0x57   :  { %166 = shalt.err (!%p163_p6)
}
  0x58   :  { %s167_s9 = scalar_lea.hbm %s240_s2, 16 }
  0x59   :  { %p168_p7 = scmp.ne.s32.totalorder %s240_s2, %s167_s9  ;;  %p171_p8 = scmp.lt.u32.totalorder %s167_s9, %s240_s2 }
  0x5b   :  { %p173_p9 = pnand %p171_p8, %p168_p7 }
  0x5d   :  { %176 = shalt.err (!%p173_p9)
}
  0x5e   :  { %98 = dma.vmem_to_hbm [thread:$0]  %s96_s4, 16, %s240_s2, [#allocation5]  }
  0x5f   :  { %181 = dma.done.wait [#allocation5], 16  }
  0x60   :  { %182 = vsyncadd [#allocation5], 4294967280 }
  0x61   :  { %102 = vsyncpa [#allocation4], 1 }
  0x62   :  { %103 = vsyncpa [#allocation7], 1 }
  0x63   :  { %104 = vsyncpa [#allocation5], 1 }

</bundles_post_ra>
